<compile_context>
chip_gen: v7x
topology: tpu7x:2x2x1
jax: 0.10.0
libtpu: 0.0.40
codegen_flags: <defaults>
</compile_context>

<pallas_src>
import functools

import jax
import jax.numpy as jnp
from jax.experimental import pallas as pl
from jax.experimental.pallas import tpu as pltpu

_LANE = 128


def simplenet_kernel(x_ref, w1_ref, b1_ref, w2_ref, b2_ref, o_ref):
    # x_ref : (3, TB)  VMEM  (features on sublanes, batch on lanes)
    # w1_ref: (3, 3)   SMEM  (out_features, in_features) -- PyTorch layout
    # b1_ref: (3,)     SMEM
    # w2_ref: (2, 3)   SMEM
    # b2_ref: (2,)     SMEM
    # o_ref : (2, TB)  VMEM
    x0 = x_ref[0:1, :].astype(jnp.float32)
    x1 = x_ref[1:2, :].astype(jnp.float32)
    x2 = x_ref[2:3, :].astype(jnp.float32)

    # Hidden layer: h_j = relu(b1[j] + sum_k w1[j, k] * x_k)   (VPU FMAs, no MXU)
    hs = []
    for j in range(3):
        h = (b1_ref[j]
             + w1_ref[j, 0] * x0
             + w1_ref[j, 1] * x1
             + w1_ref[j, 2] * x2)
        hs.append(jnp.maximum(h, 0.0))

    # Output layer: y_j = b2[j] + sum_k w2[j, k] * h_k
    ys = []
    for j in range(2):
        y = (b2_ref[j]
             + w2_ref[j, 0] * hs[0]
             + w2_ref[j, 1] * hs[1]
             + w2_ref[j, 2] * hs[2])
        ys.append(y)

    # Single lane-dense (2, TB) store.
    o_ref[...] = jnp.concatenate(ys, axis=0).astype(o_ref.dtype)


@functools.partial(jax.jit, static_argnames=("block_b",))
def simplenet_forward(x, w1, b1, w2, b2, block_b=512):
    """SimpleNet forward. x: (B, 3); w1: (3, 3); b1: (3,); w2: (2, 3); b2: (2,)
    (PyTorch nn.Linear layouts). Returns (B, 2)."""
    B, f_in = x.shape
    assert f_in == 3 and w1.shape == (3, 3) and w2.shape == (2, 3)

    # Batch tile: a multiple of 128 lanes, no larger than needed, capped at block_b.
    b_lane = ((B + _LANE - 1) // _LANE) * _LANE
    tb = max(_LANE, min(((block_b + _LANE - 1) // _LANE) * _LANE, b_lane))
    num_tiles = pl.cdiv(B, tb)
    bp = num_tiles * tb

    # Wrapper-side layout plumbing: batch -> lanes, zero-pad to whole tiles.
    xt = jnp.pad(x.T, ((0, 0), (0, bp - B)))  # (3, Bp)

    out_t = pl.pallas_call(
        simplenet_kernel,
        out_shape=jax.ShapeDtypeStruct((2, bp), x.dtype),
        grid=(num_tiles,),
        in_specs=[
            # Activations: batch-tiled, lane-dense.
            pl.BlockSpec((3, tb), lambda i: (0, i)),
            # Parameters: tiny, resident in SMEM, read as scalars for broadcast-FMAs.
            pl.BlockSpec(memory_space=pltpu.MemorySpace.SMEM),
            pl.BlockSpec(memory_space=pltpu.MemorySpace.SMEM),
            pl.BlockSpec(memory_space=pltpu.MemorySpace.SMEM),
            pl.BlockSpec(memory_space=pltpu.MemorySpace.SMEM),
        ],
        out_specs=pl.BlockSpec((2, tb), lambda i: (0, i)),
        compiler_params=pltpu.CompilerParams(
            # Batch tiles are independent -> dual-TC sharding on v7x;
            # harmless no-op on single-TC v5e/v6e.
            dimension_semantics=("parallel",),
        ),
        cost_estimate=pl.CostEstimate(
            flops=30 * bp,  # (2*3*3 + 2*2*3) per batch element
            transcendentals=0,
            bytes_accessed=(3 * bp + 2 * bp + 9 + 3 + 6 + 2) * 4,
        ),
    )(xt, w1, b1, w2, b2)

    # Back to PyTorch layout (B, 2); drop batch padding.
    return out_t[:, :B].T


if __name__ == "__main__":
    key = jax.random.PRNGKey(0)
    k_x, k_w1, k_b1, k_w2, k_b2, k_x2 = jax.random.split(key, 6)

    # Deterministic parameters with nn.Linear(3,3) / nn.Linear(3,2) shapes.
    w1 = jax.random.normal(k_w1, (3, 3), dtype=jnp.float32) * 0.5
    b1 = jax.random.normal(k_b1, (3,), dtype=jnp.float32) * 0.1
    w2 = jax.random.normal(k_w2, (2, 3), dtype=jnp.float32) * 0.5
    b2 = jax.random.normal(k_b2, (2,), dtype=jnp.float32) * 0.1

    def reference(xx):
        return jnp.maximum(xx @ w1.T + b1, 0.0) @ w2.T + b2

    # Small batch (single 128-lane tile).
    x_small = jax.random.normal(k_x, (8, 3), dtype=jnp.float32)
    out_small = jax.block_until_ready(simplenet_forward(x_small, w1, b1, w2, b2))
    assert out_small.shape == (8, 2)
    assert jnp.allclose(out_small, reference(x_small), atol=1e-5, rtol=1e-5)

    # Larger batch exercising the multi-tile pipeline + padding path (3 tiles of 256).
    x_big = jax.random.normal(k_x2, (640, 3), dtype=jnp.float32)
    out_big = jax.block_until_ready(
        simplenet_forward(x_big, w1, b1, w2, b2, block_b=256))
    assert out_big.shape == (640, 2)
    assert jnp.allclose(out_big, reference(x_big), atol=1e-5, rtol=1e-5)

    print("KERNEL_OK")
</pallas_src>

<mosaic_0001>
module attributes {stable_mosaic.version = 11 : i64} {
  func.func @simplenet_kernel(%arg0: i32, %arg1: memref<3x128xf32, #tpu.memory_space<vmem>>, %arg2: memref<3x3xf32, #tpu.memory_space<smem>>, %arg3: memref<3xf32, #tpu.memory_space<smem>>, %arg4: memref<2x3xf32, #tpu.memory_space<smem>>, %arg5: memref<2xf32, #tpu.memory_space<smem>>, %arg6: memref<2x128xf32, #tpu.memory_space<vmem>>) attributes {dimension_semantics = [#tpu.dimension_semantics<parallel>], iteration_bounds = array<i64: 1>, scalar_prefetch = 0 : i64, scratch_operands = 0 : i64, tpu.core_type = #tpu.core_type<tc>, window_params = [{transform_indices = @transform_0, window_bounds = array<i64: 3, 128>}, {transform_indices = @transform_1, window_bounds = array<i64: 3, 3>}, {transform_indices = @transform_2, window_bounds = array<i64: 3>}, {transform_indices = @transform_3, window_bounds = array<i64: 2, 3>}, {transform_indices = @transform_4, window_bounds = array<i64: 2>}, {transform_indices = @transform_5, window_bounds = array<i64: 2, 128>}]} {
    %c0 = arith.constant 0 : index
    %c0_0 = arith.constant 0 : index
    %0 = vector.load %arg1[%c0, %c0_0] : memref<3x128xf32, #tpu.memory_space<vmem>>, vector<1x128xf32>
    %c1 = arith.constant 1 : index
    %c0_1 = arith.constant 0 : index
    %1 = vector.load %arg1[%c1, %c0_1] : memref<3x128xf32, #tpu.memory_space<vmem>>, vector<1x128xf32>
    %c2 = arith.constant 2 : index
    %c0_2 = arith.constant 0 : index
    %2 = vector.load %arg1[%c2, %c0_2] : memref<3x128xf32, #tpu.memory_space<vmem>>, vector<1x128xf32>
    %c0_3 = arith.constant 0 : index
    %3 = memref.load %arg3[%c0_3] : memref<3xf32, #tpu.memory_space<smem>>
    %c0_4 = arith.constant 0 : index
    %c0_5 = arith.constant 0 : index
    %4 = memref.load %arg2[%c0_4, %c0_5] : memref<3x3xf32, #tpu.memory_space<smem>>
    %5 = vector.broadcast %4 : f32 to vector<1x128xf32>
    %6 = arith.mulf %5, %0 : vector<1x128xf32>
    %7 = vector.broadcast %3 : f32 to vector<1x128xf32>
    %8 = arith.addf %7, %6 : vector<1x128xf32>
    %c0_6 = arith.constant 0 : index
    %c1_7 = arith.constant 1 : index
    %9 = memref.load %arg2[%c0_6, %c1_7] : memref<3x3xf32, #tpu.memory_space<smem>>
    %10 = vector.broadcast %9 : f32 to vector<1x128xf32>
    %11 = arith.mulf %10, %1 : vector<1x128xf32>
    %12 = arith.addf %8, %11 : vector<1x128xf32>
    %c0_8 = arith.constant 0 : index
    %c2_9 = arith.constant 2 : index
    %13 = memref.load %arg2[%c0_8, %c2_9] : memref<3x3xf32, #tpu.memory_space<smem>>
    %14 = vector.broadcast %13 : f32 to vector<1x128xf32>
    %15 = arith.mulf %14, %2 : vector<1x128xf32>
    %16 = arith.addf %12, %15 : vector<1x128xf32>
    %cst = arith.constant 0.000000e+00 : f32
    %17 = vector.broadcast %cst : f32 to vector<1x128xf32>
    %18 = arith.maximumf %16, %17 : vector<1x128xf32>
    %c1_10 = arith.constant 1 : index
    %19 = memref.load %arg3[%c1_10] : memref<3xf32, #tpu.memory_space<smem>>
    %c1_11 = arith.constant 1 : index
    %c0_12 = arith.constant 0 : index
    %20 = memref.load %arg2[%c1_11, %c0_12] : memref<3x3xf32, #tpu.memory_space<smem>>
    %21 = vector.broadcast %20 : f32 to vector<1x128xf32>
    %22 = arith.mulf %21, %0 : vector<1x128xf32>
    %23 = vector.broadcast %19 : f32 to vector<1x128xf32>
    %24 = arith.addf %23, %22 : vector<1x128xf32>
    %c1_13 = arith.constant 1 : index
    %c1_14 = arith.constant 1 : index
    %25 = memref.load %arg2[%c1_13, %c1_14] : memref<3x3xf32, #tpu.memory_space<smem>>
    %26 = vector.broadcast %25 : f32 to vector<1x128xf32>
    %27 = arith.mulf %26, %1 : vector<1x128xf32>
    %28 = arith.addf %24, %27 : vector<1x128xf32>
    %c1_15 = arith.constant 1 : index
    %c2_16 = arith.constant 2 : index
    %29 = memref.load %arg2[%c1_15, %c2_16] : memref<3x3xf32, #tpu.memory_space<smem>>
    %30 = vector.broadcast %29 : f32 to vector<1x128xf32>
    %31 = arith.mulf %30, %2 : vector<1x128xf32>
    %32 = arith.addf %28, %31 : vector<1x128xf32>
    %cst_17 = arith.constant 0.000000e+00 : f32
    %33 = vector.broadcast %cst_17 : f32 to vector<1x128xf32>
    %34 = arith.maximumf %32, %33 : vector<1x128xf32>
    %c2_18 = arith.constant 2 : index
    %35 = memref.load %arg3[%c2_18] : memref<3xf32, #tpu.memory_space<smem>>
    %c2_19 = arith.constant 2 : index
    %c0_20 = arith.constant 0 : index
    %36 = memref.load %arg2[%c2_19, %c0_20] : memref<3x3xf32, #tpu.memory_space<smem>>
    %37 = vector.broadcast %36 : f32 to vector<1x128xf32>
    %38 = arith.mulf %37, %0 : vector<1x128xf32>
    %39 = vector.broadcast %35 : f32 to vector<1x128xf32>
    %40 = arith.addf %39, %38 : vector<1x128xf32>
    %c2_21 = arith.constant 2 : index
    %c1_22 = arith.constant 1 : index
    %41 = memref.load %arg2[%c2_21, %c1_22] : memref<3x3xf32, #tpu.memory_space<smem>>
    %42 = vector.broadcast %41 : f32 to vector<1x128xf32>
    %43 = arith.mulf %42, %1 : vector<1x128xf32>
    %44 = arith.addf %40, %43 : vector<1x128xf32>
    %c2_23 = arith.constant 2 : index
    %c2_24 = arith.constant 2 : index
    %45 = memref.load %arg2[%c2_23, %c2_24] : memref<3x3xf32, #tpu.memory_space<smem>>
    %46 = vector.broadcast %45 : f32 to vector<1x128xf32>
    %47 = arith.mulf %46, %2 : vector<1x128xf32>
    %48 = arith.addf %44, %47 : vector<1x128xf32>
    %cst_25 = arith.constant 0.000000e+00 : f32
    %49 = vector.broadcast %cst_25 : f32 to vector<1x128xf32>
    %50 = arith.maximumf %48, %49 : vector<1x128xf32>
    %c0_26 = arith.constant 0 : index
    %51 = memref.load %arg5[%c0_26] : memref<2xf32, #tpu.memory_space<smem>>
    %c0_27 = arith.constant 0 : index
    %c0_28 = arith.constant 0 : index
    %52 = memref.load %arg4[%c0_27, %c0_28] : memref<2x3xf32, #tpu.memory_space<smem>>
    %53 = vector.broadcast %52 : f32 to vector<1x128xf32>
    %54 = arith.mulf %53, %18 : vector<1x128xf32>
    %55 = vector.broadcast %51 : f32 to vector<1x128xf32>
    %56 = arith.addf %55, %54 : vector<1x128xf32>
    %c0_29 = arith.constant 0 : index
    %c1_30 = arith.constant 1 : index
    %57 = memref.load %arg4[%c0_29, %c1_30] : memref<2x3xf32, #tpu.memory_space<smem>>
    %58 = vector.broadcast %57 : f32 to vector<1x128xf32>
    %59 = arith.mulf %58, %34 : vector<1x128xf32>
    %60 = arith.addf %56, %59 : vector<1x128xf32>
    %c0_31 = arith.constant 0 : index
    %c2_32 = arith.constant 2 : index
    %61 = memref.load %arg4[%c0_31, %c2_32] : memref<2x3xf32, #tpu.memory_space<smem>>
    %62 = vector.broadcast %61 : f32 to vector<1x128xf32>
    %63 = arith.mulf %62, %50 : vector<1x128xf32>
    %64 = arith.addf %60, %63 : vector<1x128xf32>
    %c1_33 = arith.constant 1 : index
    %65 = memref.load %arg5[%c1_33] : memref<2xf32, #tpu.memory_space<smem>>
    %c1_34 = arith.constant 1 : index
    %c0_35 = arith.constant 0 : index
    %66 = memref.load %arg4[%c1_34, %c0_35] : memref<2x3xf32, #tpu.memory_space<smem>>
    %67 = vector.broadcast %66 : f32 to vector<1x128xf32>
    %68 = arith.mulf %67, %18 : vector<1x128xf32>
    %69 = vector.broadcast %65 : f32 to vector<1x128xf32>
    %70 = arith.addf %69, %68 : vector<1x128xf32>
    %c1_36 = arith.constant 1 : index
    %c1_37 = arith.constant 1 : index
    %71 = memref.load %arg4[%c1_36, %c1_37] : memref<2x3xf32, #tpu.memory_space<smem>>
    %72 = vector.broadcast %71 : f32 to vector<1x128xf32>
    %73 = arith.mulf %72, %34 : vector<1x128xf32>
    %74 = arith.addf %70, %73 : vector<1x128xf32>
    %c1_38 = arith.constant 1 : index
    %c2_39 = arith.constant 2 : index
    %75 = memref.load %arg4[%c1_38, %c2_39] : memref<2x3xf32, #tpu.memory_space<smem>>
    %76 = vector.broadcast %75 : f32 to vector<1x128xf32>
    %77 = arith.mulf %76, %50 : vector<1x128xf32>
    %78 = arith.addf %74, %77 : vector<1x128xf32>
    %79 = tpu.concatenate %64, %78 in 0 : vector<1x128xf32>, vector<1x128xf32> -> vector<2x128xf32>
    %c0_40 = arith.constant 0 : index
    %c0_41 = arith.constant 0 : index
    %80 = vector.load %arg6[%c0_40, %c0_41] : memref<2x128xf32, #tpu.memory_space<vmem>>, vector<2x128xf32>
    tpu.vector_store %arg6[%c0_40, %c0_41], %79 {strides = array<i32>} : memref<2x128xf32, #tpu.memory_space<vmem>>, vector<2x128xf32>,
    return
  }
  func.func @transform_0(%arg0: i32) -> (i32, i32) {
    %c0_i32 = arith.constant 0 : i32
    %c0_i32_0 = arith.constant 0 : i32
    return %c0_i32, %arg0 : i32, i32
  }
  func.func @transform_1(%arg0: i32) -> (i32, i32) {
    %c0_i32 = arith.constant 0 : i32
    %c0_i32_0 = arith.constant 0 : i32
    %c0_i32_1 = arith.constant 0 : i32
    return %c0_i32, %c0_i32_0 : i32, i32
  }
  func.func @transform_2(%arg0: i32) -> i32 {
    %c0_i32 = arith.constant 0 : i32
    %c0_i32_0 = arith.constant 0 : i32
    return %c0_i32 : i32
  }
  func.func @transform_3(%arg0: i32) -> (i32, i32) {
    %c0_i32 = arith.constant 0 : i32
    %c0_i32_0 = arith.constant 0 : i32
    %c0_i32_1 = arith.constant 0 : i32
    return %c0_i32, %c0_i32_0 : i32, i32
  }
  func.func @transform_4(%arg0: i32) -> i32 {
    %c0_i32 = arith.constant 0 : i32
    %c0_i32_0 = arith.constant 0 : i32
    return %c0_i32 : i32
  }
  func.func @transform_5(%arg0: i32) -> (i32, i32) {
    %c0_i32 = arith.constant 0 : i32
    %c0_i32_0 = arith.constant 0 : i32
    return %c0_i32, %arg0 : i32, i32
  }
}

</mosaic_0001>

<bundles_post_ra>
// kernel: simplenet_forward.1
= control target key start
LH: loop header
LB: loop body
LE: loop exit
PB: predicated region body
PF: predicated region fallthrough
CT: control target
= control target key end

     0   :  { %10 = vsyncpa [#allocation3], 0  ;;  %s328_s0 = inlined_call_operand.vmem [shape: f32[3,128], index: 0, kind: input, shape index: {}]   ;;  %s329_s1 = inlined_call_operand.vmem [shape: f32[3,3], index: 1, kind: input, shape index: {}]   ;;  %s330_s2 = inlined_call_operand.vmem [shape: f32[3], index: 2, kind: input, shape index: {}]   ;;  %s331_s3 = inlined_call_operand.vmem [shape: f32[2,3], index: 3, kind: input, shape index: {}]   ;;  %s332_s4 = inlined_call_operand.vmem [shape: f32[2], index: 4, kind: input, shape index: {}]   ;;  %s333_s5 = inlined_call_operand.vmem [shape: f32[2,128], index: 5, kind: output, shape index: {}]  }
   0x1   :  { %11 = vsyncpa [#allocation5], 0  ;;  %s31_s20 = sshll.u32 %s330_s2, 4  ;;  %s32_s20 = int_to_ptr.vmem [resolvable:$true] %s31_s20 }
   0x2   :  { %12 = vsyncpa [#allocation8], 0  ;;  %s21_s23 = sshll.u32 %s329_s1, 4  ;;  %s177_s24 = scalar_lea.vmem %s32_s20, 16  ;;  %s22_s23 = int_to_ptr.vmem [resolvable:$true] %s21_s23 }
   0x3   :  { %p178_p0 = scmp.ne.s32.totalorder %s32_s20, %s177_s24  ;;  %p182_p1 = scmp.lt.s32.totalorder %s32_s20, %s32_s20 }
   0x4   :  { %p183_p2 = scmp.lt.s32.totalorder %s177_s24, %s177_s24 }
   0x6   :  { %p184_p3 = por %p183_p2, %p182_p1 }
   0x8   :  { %p185_p4 = pnand %p184_p3, %p178_p0 }
   0xa   :  { %188 = shalt.err (!%p185_p4)
}
   0xb   :  { %s231_s25 = smov [#allocation4]   ;;  %s189_s26 = scalar_lea.vmem %s22_s23, 64 }
   0xc   :  { %34 = dma.vmem_to_smem %s32_s20, 16, %s231_s25, [#allocation5]  }
   0xd   :  { %p190_p5 = scmp.ne.s32.totalorder %s22_s23, %s189_s26  ;;  %p194_p6 = scmp.lt.s32.totalorder %s22_s23, %s22_s23 }
   0xe   :  { %p195_p7 = scmp.lt.s32.totalorder %s189_s26, %s189_s26 }
  0x10   :  { %p196_p8 = por %p195_p7, %p194_p6 }
  0x12   :  { %p197_p9 = pnand %p196_p8, %p190_p5 }
  0x14   :  { %200 = shalt.err (!%p197_p9)
}
  0x15   :  { %s232_s2 = smov [#allocation2]   ;;  %s41_s28 = sshll.u32 %s331_s3, 4  ;;  %s42_s28 = int_to_ptr.vmem [resolvable:$true] %s41_s28 }
  0x16   :  { %24 = dma.vmem_to_smem %s22_s23, 64, %s232_s2, [#allocation3]  }
  0x17   :  { %s51_s6 = sshll.u32 %s332_s4, 4  ;;  %s201_s7 = scalar_lea.vmem %s42_s28, 32  ;;  %s52_s6 = int_to_ptr.vmem [resolvable:$true] %s51_s6 }
  0x18   :  { %p202_p10 = scmp.ne.s32.totalorder %s42_s28, %s201_s7  ;;  %p206_p11 = scmp.lt.s32.totalorder %s42_s28, %s42_s28 }
  0x19   :  { %p207_p12 = scmp.lt.s32.totalorder %s201_s7, %s201_s7 }
  0x1b   :  { %p208_p13 = por %p207_p12, %p206_p11 }
  0x1d   :  { %p209_p0 = pnand %p208_p13, %p202_p10 }
  0x1f   :  { %212 = shalt.err (!%p209_p0)
}
  0x20   :  { %s233_s8 = smov [#allocation6]   ;;  %s213_s9 = scalar_lea.vmem %s52_s6, 16 }
  0x21   :  { %44 = dma.vmem_to_smem %s42_s28, 32, %s233_s8, [#allocation5]  }
  0x22   :  { %p214_p1 = scmp.ne.s32.totalorder %s52_s6, %s213_s9  ;;  %p218_p2 = scmp.lt.s32.totalorder %s52_s6, %s52_s6 }
  0x23   :  { %p219_p3 = scmp.lt.s32.totalorder %s213_s9, %s213_s9 }
  0x25   :  { %p220_p4 = por %p219_p3, %p218_p2 }
  0x27   :  { %p221_p5 = pnand %p220_p4, %p214_p1 }
  0x29   :  { %224 = shalt.err (!%p221_p5)
}
  0x2a   :  { %s234_s3 = smov [#allocation7]  }
  0x2b   :  { %54 = dma.vmem_to_smem %s52_s6, 16, %s234_s3, [#allocation8]  }
  0x2c   :  { %225 = dma.done.wait [#allocation3], 64  }
  0x2d   :  { %226 = vsyncadd [#allocation3], 4294967232 }
  0x2e   :  { %227 = dma.done.wait [#allocation5], 48  }
  0x2f   :  { %228 = vsyncadd [#allocation5], 4294967248 }
  0x30   :  { %229 = dma.done.wait [#allocation8], 16  }
  0x31   :  { %230 = vsyncadd [#allocation8], 4294967280 }
  0x32   :  { %67 = sfence }
  0x33   :  { %s71_s4 = sld [smem:[#allocation4]]  ;;  %s157_s11 = sld [smem:[#allocation2 + $0x1]]  ;;  %v68_v0 = vld [vmem:[%s328_s0] sm:$0x1]  ;;  %v69_v1 = vld [vmem:[%s328_s0 + $0x1] sm:$0x1] }
  0x34   :  { %s72_s10 = sld [smem:[#allocation2]]  ;;  %s158_s12 = sld [smem:[#allocation2 + $0x2]]  ;;  %v70_v2 = vld [vmem:[%s328_s0 + $0x2] sm:$0x1]  ;;  %vm147_vm0 = vcmask 1040384  }
  0x35   :  { %s277_s13 = sld [smem:[#allocation4 + $0x1]]  ;;  %s160_s14 = sld [smem:[#allocation2 + $0x80]] }
  0x36   :  { %s161_s17 = sld [smem:[#allocation2 + $0x81]]  ;;  %s162_s18 = sld [smem:[#allocation2 + $0x82]] }
  0x37   :  { %s285_s21 = sld [smem:[#allocation4 + $0x2]]  ;;  %s287_s22 = sld [smem:[#allocation2 + $0x100]] }
  0x38   :  { %s292_s25 = sld [smem:[#allocation2 + $0x101]]  ;;  %s294_s26 = sld [smem:[#allocation2 + $0x102]] }
  0x39   :  { %v75_v4 = vstv %s71_s4  ;;  %s296_s2 = sld [smem:[#allocation6]]  ;;  %v78_v6 = vstv %s157_s11  ;;  %s300_s27 = sld [smem:[#allocation6 + $0x1]] }
  0x3a   :  { %v73_v3 = vstv %s72_s10  ;;  %v82_v7 = vstv %s158_s12  ;;  %s298_s1 = sld [smem:[#allocation7]]  ;;  %v79_v8 = vmul.f32 %v78_v6, %v69_v1  ;;  %s303_s0 = sld [smem:[#allocation7 + $0x1]] }
  0x3b   :  { %v74_v5 = vmul.f32 %v73_v3, %v68_v0  ;;  %v83_v9 = vmul.f32 %v82_v7, %v70_v2  ;;  %v88_v10 = vstv %s160_s14  ;;  %v90_v11 = vstv %s277_s13  ;;  %s305_s28 = sld [smem:[#allocation6 + $0x80]]  ;;  %s307_s29 = sld [smem:[#allocation6 + $0x81]] }
  0x3c   :  { %v89_v13 = vmul.f32 %v88_v10, %v68_v0  ;;  %v93_v14 = vstv %s161_s17  ;;  %v97_v15 = vstv %s162_s18  ;;  %s311_s30 = sld [smem:[#allocation6 + $0x2]] }
  0x3d   :  { %v76_v12 = vadd.f32 %v75_v4, %v74_v5  ;;  %v94_v16 = vmul.f32 %v93_v14, %v69_v1  ;;  %v98_v17 = vmul.f32 %v97_v15, %v70_v2  ;;  %v103_v18 = vstv %s287_s22  ;;  %s313_s6 = sld [smem:[#allocation6 + $0x82]] }
  0x3e   :  { %v105_v19 = vstv %s285_s21  ;;  %v91_v21 = vadd.f32 %v90_v11, %v89_v13  ;;  %v104_v22 = vmul.f32 %v103_v18, %v68_v0  ;;  %v108_v23 = vstv %s292_s25 }
  0x3f   :  { %v80_v20 = vadd.f32 %v79_v8, %v76_v12  ;;  %v109_v24 = vmul.f32 %v108_v23, %v69_v1  ;;  %v112_v25 = vstv %s294_s26  ;;  %v118_v30 = vstv %s296_s2 }
  0x40   :  { %v95_v27 = vadd.f32 %v94_v16, %v91_v21  ;;  %v106_v28 = vadd.f32 %v105_v19, %v104_v22  ;;  %v113_v29 = vmul.f32 %v112_v25, %v70_v2  ;;  %v120_v35 = vstv %s298_s1 }
  0x41   :  { %v84_v26 = vadd.f32 %v83_v9, %v80_v20  ;;  %v132_v31 = vstv %s305_s28  ;;  %v123_v36 = vstv %s300_s27  ;;  %v134_v37 = vstv %s303_s0 }
  0x42   :  { %v99_v33 = vadd.f32 %v98_v17, %v95_v27  ;;  %v110_v34 = vadd.f32 %v109_v24, %v106_v28  ;;  %v137_v38 = vstv %s307_s29  ;;  %v127_v43 = vstv %s311_s30 }
  0x43   :  { %v85_v32 = vmax.f32 %v84_v26, 0.0  ;;  %v141_v44 = vstv %s313_s6 }
  0x44   :  { %v100_v39 = vmax.f32 %v99_v33, 0.0  ;;  %v114_v40 = vadd.f32 %v113_v29, %v110_v34 }
  0x45   :  { %v119_v41 = vmul.f32 %v118_v30, %v85_v32  ;;  %v133_v42 = vmul.f32 %v132_v31, %v85_v32 }
  0x46   :  { %v115_v45 = vmax.f32 %v114_v40, 0.0  ;;  %v124_v47 = vmul.f32 %v123_v36, %v100_v39  ;;  %v138_v49 = vmul.f32 %v137_v38, %v100_v39 }
  0x47   :  { %v121_v46 = vadd.f32 %v120_v35, %v119_v41  ;;  %v135_v48 = vadd.f32 %v134_v37, %v133_v42 }
  0x48   :  { %v128_v51 = vmul.f32 %v127_v43, %v115_v45  ;;  %v142_v52 = vmul.f32 %v141_v44, %v115_v45 }
  0x49   :  { %v125_v50 = vadd.f32 %v124_v47, %v121_v46  ;;  %v139_v53 = vadd.f32 %v138_v49, %v135_v48 }
  0x4b   :  { %v129_v54 = vadd.f32 %v128_v51, %v125_v50  ;;  %v143_v55 = vadd.f32 %v142_v52, %v139_v53 }
  0x4d   :  { %v145_v56 = vrot.slane %v143_v55, 7 }
  0x4f   :  { %v148_v57 = vsel %vm147_vm0, %v129_v54, %v145_v56 }
  0x50   :  { %149 = vst [vmem:[%s333_s5] sm:$0x3] %v148_v57 }
  0x51   :  { %154 = vsyncpa [#allocation3], 1 }
  0x52   :  { %155 = vsyncpa [#allocation5], 1 }
  0x53   :  { %156 = vsyncpa [#allocation8], 1 }

</bundles_post_ra>
